<compile_context>
chip_gen: v7x
topology: tpu7x:2x2x1
jax: 0.10.0
libtpu: 0.0.40
codegen_flags: <defaults>
</compile_context>

<pallas_src>
import jax
import jax.numpy as jnp
from jax import lax
from jax.experimental import pallas as pl
from jax.experimental.pallas import tpu as pltpu


def _round_up(x, m):
    return (x + m - 1) // m * m


def _device_kind():
    try:
        return jax.devices()[0].device_kind.lower()
    except Exception:
        return ""


def _vmem_capacity_bytes():
    """Best-effort VMEM capacity query with a generation-aware fallback."""
    try:
        info = pltpu.get_tpu_info()
        for name in ("vmem_capacity_bytes", "vmem_size_bytes", "vmem_bytes"):
            v = getattr(info, name, None)
            if v:
                return int(v)
    except Exception:
        pass
    kind = _device_kind()
    if "v7" in kind or "7x" in kind:
        return 64 * 1024 * 1024           # v7x: 64 MiB per TensorCore
    if any(k in kind for k in ("v4", "v5", "v6")):
        return 128 * 1024 * 1024          # v4 / v5e / v5p / v6e: 128 MiB
    return 64 * 1024 * 1024               # unknown: be conservative


def _num_tensorcores():
    """TensorCores per chip: 2 on v4/v5p/v7x style chips, 1 on v5e/v6e."""
    try:
        info = pltpu.get_tpu_info()
        for name in ("num_cores", "core_count", "num_tensorcores"):
            v = getattr(info, name, None)
            if v:
                return int(v)
    except Exception:
        pass
    kind = _device_kind()
    if any(k in kind for k in ("v4", "v5p", "v7", "7x")):
        return 2
    return 1


def _choose_tiling(B, C, S, bytes_per_pos, max_rows_override=None):
    """Pick block rows R, sub-tile rows r_sub, padded rows, grid split, limit."""
    vmem_cap = _vmem_capacity_bytes()
    n_cores = _num_tensorcores()
    vmem_limit = (100 << 20) if vmem_cap >= (100 << 20) else (48 << 20)

    # Sub-tile rows per inner-loop step: bounds the in-kernel f32 softmax
    # temporaries (~6 buffers of (C, r_sub, 128) f32) independent of block
    # size; nominally 64 rows, shrunk for very large class counts.
    r_sub = (vmem_limit // 3) // (6 * C * 128 * 4)
    r_sub = max(8, min(64, r_sub // 8 * 8))

    # Double-buffered input footprint must fit in what remains after the
    # bounded temporaries, the (C,8,128) accumulators and scratch headroom.
    temp_bytes = 6 * C * r_sub * 128 * 4
    acc_bytes = 3 * C * 8 * 128 * 4
    avail = max(0, vmem_limit - temp_bytes - acc_bytes - (2 << 20))
    max_ts = int(avail * 0.45) // (C * bytes_per_pos)   # 2x for double buffer
    max_ts = max(r_sub * 128, min(max_ts, 512 * 1024))
    r_max = max(r_sub, (max_ts // 128) // r_sub * r_sub)
    if max_rows_override is not None:                    # testing / tuning hook
        cap = max(8, max_rows_override // 8 * 8)
        if cap < r_sub:
            r_sub = cap
        r_max = max(r_sub, min(r_max, cap) // r_sub * r_sub)

    n_rows = (S + 127) // 128
    if n_rows <= r_max:
        R = _round_up(n_rows, 8)
        if R <= r_sub:
            r_sub = R
        R = _round_up(R, r_sub)
        n_rows_pad = R
        n_blocks = 1
    else:
        R = r_max
        n_rows_pad = _round_up(n_rows, R)
        n_blocks = n_rows_pad // R

    # Megacore: on 2-TensorCore chips, if the batch axis alone cannot feed
    # both cores evenly (odd B), split the spatial axis into 2 parallel slices
    # with per-slice partial outputs.  Never split on 1-TC chips (v5e/v6e).
    n_outer = 1
    if n_cores >= 2 and (B % 2 == 1) and n_blocks >= 2:
        n_outer = 2
        if n_blocks % 2:
            n_rows_pad += R
            n_blocks += 1
    n_inner = n_blocks // n_outer
    return R, r_sub, n_rows_pad, n_outer, n_inner, vmem_limit


def _make_dice_sums_kernel(use_softmax, C, R, r_sub, hard_labels):
    n_sub = R // r_sub

    def _fast_recip(s):
        # EUP approx reciprocal + one f32 Newton step (~1e-7 rel error).
        inv = pl.reciprocal(s, approx=True)
        return inv * (2.0 - s * inv)

    def kernel(p_ref, t_ref, inter_ref, u1_ref, u2_ref,
               inter_acc, u1_acc, u2_acc):
        si = pl.program_id(2)
        n_inner = pl.num_programs(2)

        @pl.when(si == 0)
        def _():
            inter_acc[...] = jnp.zeros_like(inter_acc)
            u1_acc[...] = jnp.zeros_like(u1_acc)
            u2_acc[...] = jnp.zeros_like(u2_acc)

        def fold(x):
            # (C, r_sub, 128) -> (C, 8, 128): pure VPU adds over (8,128) tiles.
            return jnp.sum(x.reshape(C, r_sub // 8, 8, 128), axis=1)

        def accumulate(p, t):
            if use_softmax:
                # Softmax over the class (major) axis: cross-register-set VPU
                # max/add, EUP exp, one reciprocal per spatial position.
                m = jnp.max(p, axis=0, keepdims=True)       # (1, r_sub, 128)
                e = jnp.exp(p - m)
                act = e * _fast_recip(jnp.sum(e, axis=0, keepdims=True))
            else:
                act = _fast_recip(1.0 + jnp.exp(-p))        # sigmoid
            inter_acc[...] += fold(act * t)
            u1_acc[...] += fold(act * act)
            if hard_labels:
                u2_acc[...] += fold(t)      # t in {0,1}  =>  t*t == t
            else:
                u2_acc[...] += fold(t * t)

        if n_sub == 1:
            accumulate(p_ref[...].astype(jnp.float32),
                       t_ref[...].astype(jnp.float32))
        else:
            # Bounded sub-tiles keep f32 temporaries ~C*r_sub*128*4 regardless
            # of how large the (HBM-amortizing) input block is.
            def sub_body(j, carry):
                r0 = pl.multiple_of(j * r_sub, r_sub)
                accumulate(
                    p_ref[:, pl.ds(r0, r_sub), :].astype(jnp.float32),
                    t_ref[:, pl.ds(r0, r_sub), :].astype(jnp.float32))
                return carry
            if n_sub <= 8:
                lax.fori_loop(0, n_sub, sub_body, 0, unroll=True)
            else:
                lax.fori_loop(0, n_sub, sub_body, 0)

        @pl.when(si == n_inner - 1)
        def _():
            def final(acc):
                s = jnp.sum(acc[...], axis=1)      # sublane reduce -> (C, 128)
                s = jnp.sum(s, axis=-1)            # lane reduce    -> (C,)
                return s[None, None, None, :]
            inter_ref[...] = final(inter_acc)
            u1_ref[...] = final(u1_acc)
            u2_ref[...] = final(u2_acc)

    return kernel


def _dice_partial_sums(predict, target, use_softmax=True, hard_labels=True,
                       max_block_rows=None):
    """predict/target: (B, C, S) -> per-(B, C) intersection, union1, union2."""
    B, C, S = predict.shape
    bytes_per_pos = predict.dtype.itemsize + target.dtype.itemsize
    R, r_sub, n_rows_pad, n_outer, n_inner, vmem_limit = _choose_tiling(
        B, C, S, bytes_per_pos, max_block_rows)

    s_pad = n_rows_pad * 128
    if s_pad != S:
        predict = jnp.pad(predict, ((0, 0), (0, 0), (0, s_pad - S)))
        target = jnp.pad(target, ((0, 0), (0, 0), (0, s_pad - S)))
    p4 = predict.reshape(B, C, n_rows_pad, 128)
    t4 = target.reshape(B, C, n_rows_pad, 128)

    kernel = _make_dice_sums_kernel(use_softmax, C, R, r_sub, hard_labels)

    out_sd = jax.ShapeDtypeStruct((B, n_outer, 1, C), jnp.float32)
    in_map = lambda b, so, si: (b, 0, so * n_inner + si, 0)
    out_map = lambda b, so, si: (b, so, 0, 0)

    inter, u1, u2 = pl.pallas_call(
        kernel,
        out_shape=(out_sd, out_sd, out_sd),
        grid_spec=pltpu.PrefetchScalarGridSpec(
            num_scalar_prefetch=0,
            grid=(B, n_outer, n_inner),
            in_specs=[
                pl.BlockSpec((None, C, R, 128), in_map),
                pl.BlockSpec((None, C, R, 128), in_map),
            ],
            out_specs=[
                pl.BlockSpec((1, 1, 1, C), out_map),
                pl.BlockSpec((1, 1, 1, C), out_map),
                pl.BlockSpec((1, 1, 1, C), out_map),
            ],
            scratch_shapes=[
                pltpu.VMEM((C, 8, 128), jnp.float32),
                pltpu.VMEM((C, 8, 128), jnp.float32),
                pltpu.VMEM((C, 8, 128), jnp.float32),
            ],
        ),
        compiler_params=pltpu.CompilerParams(
            # NOTE: if "parallel" does not shard across v7x's 2 TensorCores in
            # a given runtime, switch the outer axes to pltpu.CORE_PARALLEL.
            dimension_semantics=("parallel", "parallel", "arbitrary"),
            vmem_limit_bytes=vmem_limit,
        ),
    )(p4, t4)

    # Sum per-outer-slice partials (n_outer > 1 only on 2-TensorCore chips).
    inter = inter[:, :, 0, :].sum(axis=1)
    u1 = u1[:, :, 0, :].sum(axis=1)
    u2 = u2[:, :, 0, :].sum(axis=1)

    # Analytic padding correction (replaces the old in-kernel mask): padded
    # predict is 0, so each padded position contributes exactly 1/C^2
    # (softmax) or 0.25 (sigmoid) per class to union_1 and nothing to the
    # intersection / union_2 (padded target is 0).
    n_pad = s_pad - S
    if n_pad:
        u1 = u1 - n_pad * ((1.0 / (C * C)) if use_softmax else 0.25)
    return inter, u1, u2


def multi_class_dice_loss(predict, target, optimize_bg=True, weight=None,
                          size_average=True, output_map='Softmax',
                          hard_labels=True, _max_block_rows=None):
    """Mirror of MultiClassDiceLoss.forward for 5-D (B, C, D, H, W) inputs.

    hard_labels=True follows the documented contract (target is one-hot): the
    target is read as bf16 (exact for 0/1) and union_2 = sum(t).  Set
    hard_labels=False for soft labels to keep the generic f32 t*t path.
    """
    assert predict.shape == target.shape, 'Input sizes must be equal.'
    assert predict.ndim == 5, 'Input must be a 5D Tensor.'
    B, C, D, H, W = predict.shape
    S = D * H * W
    p = predict.reshape(B, C, S)
    t = target.reshape(B, C, S)
    if hard_labels and t.dtype.itemsize > 2:
        # 0/1 one-hot labels are exact in bf16; halves target HBM traffic.
        t = t.astype(jnp.bfloat16)

    inter, u1, u2 = _dice_partial_sums(
        p, t, use_softmax=(output_map == 'Softmax'), hard_labels=hard_labels,
        max_block_rows=_max_block_rows)

    dice = (2.0 * inter + 1e-05) / (u1 + u2 + 1e-05)   # (B, C)
    if not optimize_bg:
        dice = dice[:, 1:]
    if weight is not None:
        if not optimize_bg:
            weight = weight[1:]
        weight = weight.shape[0] * weight / jnp.sum(weight)
        dice = dice * weight
    dice_loss = 1.0 - jnp.mean(dice, axis=1)            # (B,)
    if size_average:
        return jnp.mean(dice_loss)
    return jnp.sum(dice_loss)


def _reference_loss(predict, target, output_map='Softmax'):
    """Pure-JAX reference of the PyTorch forward (defaults)."""
    if output_map == 'Softmax':
        p = jax.nn.softmax(predict, axis=1)
    else:
        p = jax.nn.sigmoid(predict)
    p = p.astype(jnp.float32)
    t = target.astype(jnp.float32)
    inter = jnp.sum(p * t, axis=(2, 3, 4))
    u1 = jnp.sum(p * p, axis=(2, 3, 4))
    u2 = jnp.sum(t * t, axis=(2, 3, 4))
    dice = (2.0 * inter + 1e-05) / (u1 + u2 + 1e-05)
    return jnp.mean(1.0 - jnp.mean(dice, axis=1))


def _make_inputs(key, B, C, D, H, W, target_dtype=jnp.float32):
    k_pred, k_cls = jax.random.split(key)
    predict = jax.random.normal(k_pred, (B, C, D, H, W), dtype=jnp.float32)
    cls = jax.random.randint(k_cls, (B, D, H, W), 0, C)
    # one-hot target with the class dim in position 1 (NCDHW, like PyTorch)
    target = jnp.transpose(jax.nn.one_hot(cls, C, dtype=target_dtype),
                           (0, 4, 1, 2, 3))
    return predict, target


if __name__ == "__main__":
    key = jax.random.PRNGKey(0)
    ks = jax.random.split(key, 5)

    def check(loss, ref, tag):
        loss = jax.block_until_ready(loss)
        ref = jax.block_until_ready(ref)
        assert jnp.allclose(loss, ref, rtol=1e-5, atol=1e-5), (tag, loss, ref)

    # 1. Spatial size a multiple of 128 (no padding), hard one-hot f32 target.
    p1, t1 = _make_inputs(ks[0], 2, 4, 4, 16, 16)
    check(multi_class_dice_loss(p1, t1), _reference_loss(p1, t1), "case1")

    # 2. Ragged spatial size: zero-pad + analytic union_1 correction.
    p2, t2 = _make_inputs(ks[1], 1, 4, 3, 10, 10)
    check(multi_class_dice_loss(p2, t2), _reference_loss(p2, t2), "case2")

    # 3. Larger block -> in-kernel sub-tile loop; target provided as bf16.
    p3, t3 = _make_inputs(ks[2], 2, 4, 8, 32, 48, target_dtype=jnp.bfloat16)
    check(multi_class_dice_loss(p3, t3), _reference_loss(p3, t3), "case3")

    # 4. Forced small blocks: multi-step grid reduction with accumulators.
    check(multi_class_dice_loss(p3, t3, _max_block_rows=32),
          _reference_loss(p3, t3), "case4")

    # 5. Odd batch (exercises the 2-TensorCore outer spatial split on v7x).
    check(multi_class_dice_loss(p3[:1], t3[:1], _max_block_rows=32),
          _reference_loss(p3[:1], t3[:1]), "case5")

    # 6. Sigmoid output map with soft labels (generic f32 t*t path).
    p6 = jax.random.normal(ks[3], (1, 3, 2, 10, 12), dtype=jnp.float32)
    t6 = jax.random.uniform(ks[4], (1, 3, 2, 10, 12), dtype=jnp.float32)
    check(multi_class_dice_loss(p6, t6, output_map='Sigmoid',
                                hard_labels=False),
          _reference_loss(p6, t6, output_map='Sigmoid'), "case6")

    print("KERNEL_OK")
</pallas_src>

<mosaic_0001>
module attributes {stable_mosaic.version = 11 : i64} {
  func.func @kernel(%arg0: i32, %arg1: i32, %arg2: i32, %arg3: memref<1x4x8x128xf32, #tpu.memory_space<vmem>>, %arg4: memref<1x4x8x128xbf16, #tpu.memory_space<vmem>>, %arg5: memref<1x1x1x4xf32, #tpu.memory_space<vmem>>, %arg6: memref<1x1x1x4xf32, #tpu.memory_space<vmem>>, %arg7: memref<1x1x1x4xf32, #tpu.memory_space<vmem>>, %arg8: memref<4x8x128xf32, #tpu.memory_space<vmem>>, %arg9: memref<4x8x128xf32, #tpu.memory_space<vmem>>, %arg10: memref<4x8x128xf32, #tpu.memory_space<vmem>>) attributes {dimension_semantics = [#tpu.dimension_semantics<parallel>, #tpu.dimension_semantics<parallel>, #tpu.dimension_semantics<arbitrary>], iteration_bounds = array<i64: 2, 1, 1>, scalar_prefetch = 0 : i64, scratch_operands = 3 : i64, tpu.core_type = #tpu.core_type<tc>, window_params = [{transform_indices = @transform_0, window_bounds = array<i64: 1, 4, 8, 128>}, {transform_indices = @transform_1, window_bounds = array<i64: 1, 4, 8, 128>}, {transform_indices = @transform_2, window_bounds = array<i64: 1, 1, 1, 4>}, {transform_indices = @transform_3, window_bounds = array<i64: 1, 1, 1, 4>}, {transform_indices = @transform_4, window_bounds = array<i64: 1, 1, 1, 4>}]} {
    %c0_i32 = arith.constant 0 : i32
    %0 = arith.cmpi eq, %arg2, %c0_i32 : i32
    %1 = arith.extui %0 : i1 to i32
    %c0_i32_0 = arith.constant 0 : i32
    %2 = arith.cmpi ne, %1, %c0_i32_0 : i32
    scf.if %2 {
      %cst_33 = arith.constant 0.000000e+00 : f32
      %42 = vector.broadcast %cst_33 : f32 to vector<4x8x128xf32>
      %c0_34 = arith.constant 0 : index
      %c0_35 = arith.constant 0 : index
      %c0_36 = arith.constant 0 : index
      %43 = vector.load %arg8[%c0_34, %c0_35, %c0_36] : memref<4x8x128xf32, #tpu.memory_space<vmem>>, vector<4x8x128xf32>
      tpu.vector_store %arg8[%c0_34, %c0_35, %c0_36], %42 {strides = array<i32>} : memref<4x8x128xf32, #tpu.memory_space<vmem>>, vector<4x8x128xf32>,
      %cst_37 = arith.constant 0.000000e+00 : f32
      %44 = vector.broadcast %cst_37 : f32 to vector<4x8x128xf32>
      %c0_38 = arith.constant 0 : index
      %c0_39 = arith.constant 0 : index
      %c0_40 = arith.constant 0 : index
      %45 = vector.load %arg9[%c0_38, %c0_39, %c0_40] : memref<4x8x128xf32, #tpu.memory_space<vmem>>, vector<4x8x128xf32>
      tpu.vector_store %arg9[%c0_38, %c0_39, %c0_40], %44 {strides = array<i32>} : memref<4x8x128xf32, #tpu.memory_space<vmem>>, vector<4x8x128xf32>,
      %cst_41 = arith.constant 0.000000e+00 : f32
      %46 = vector.broadcast %cst_41 : f32 to vector<4x8x128xf32>
      %c0_42 = arith.constant 0 : index
      %c0_43 = arith.constant 0 : index
      %c0_44 = arith.constant 0 : index
      %47 = vector.load %arg10[%c0_42, %c0_43, %c0_44] : memref<4x8x128xf32, #tpu.memory_space<vmem>>, vector<4x8x128xf32>
      tpu.vector_store %arg10[%c0_42, %c0_43, %c0_44], %46 {strides = array<i32>} : memref<4x8x128xf32, #tpu.memory_space<vmem>>, vector<4x8x128xf32>,
    } else {
    }
    %c0 = arith.constant 0 : index
    %c0_1 = arith.constant 0 : index
    %c0_2 = arith.constant 0 : index
    %c0_3 = arith.constant 0 : index
    %3 = vector.load %arg3[%c0, %c0_1, %c0_2, %c0_3] : memref<1x4x8x128xf32, #tpu.memory_space<vmem>>, vector<1x4x8x128xf32>
    %4 = vector.shape_cast %3 : vector<1x4x8x128xf32> to vector<4x8x128xf32>
    %c0_4 = arith.constant 0 : index
    %c0_5 = arith.constant 0 : index
    %c0_6 = arith.constant 0 : index
    %c0_7 = arith.constant 0 : index
    %5 = vector.load %arg4[%c0_4, %c0_5, %c0_6, %c0_7] : memref<1x4x8x128xbf16, #tpu.memory_space<vmem>>, vector<1x4x8x128xbf16>
    %6 = vector.shape_cast %5 : vector<1x4x8x128xbf16> to vector<4x8x128xbf16>
    %7 = arith.extf %6 : vector<4x8x128xbf16> to vector<4x8x128xf32>
    %cst = arith.constant dense<0xFF800000> : vector<8x128xf32>
    %8 = vector.multi_reduction <maximumf>, %4, %cst [0] : vector<4x8x128xf32> to vector<8x128xf32>
    %9 = vector.shape_cast %8 : vector<8x128xf32> to vector<1x8x128xf32>
    %10 = vector.broadcast %9 : vector<1x8x128xf32> to vector<4x8x128xf32>
    %11 = arith.subf %4, %10 : vector<4x8x128xf32>
    %12 = math.exp %11 : vector<4x8x128xf32>
    %cst_8 = arith.constant dense<0.000000e+00> : vector<8x128xf32>
    %13 = vector.multi_reduction <add>, %12, %cst_8 [0] : vector<4x8x128xf32> to vector<8x128xf32>
    %14 = vector.shape_cast %13 : vector<8x128xf32> to vector<1x8x128xf32>
    %15 = tpu.reciprocal %14 {approx = true} : vector<1x8x128xf32> -> vector<1x8x128xf32>
    %16 = arith.mulf %14, %15 : vector<1x8x128xf32>
    %cst_9 = arith.constant 2.000000e+00 : f32
    %17 = vector.broadcast %cst_9 : f32 to vector<1x8x128xf32>
    %18 = arith.subf %17, %16 : vector<1x8x128xf32>
    %19 = arith.mulf %15, %18 : vector<1x8x128xf32>
    %20 = vector.broadcast %19 : vector<1x8x128xf32> to vector<4x8x128xf32>
    %21 = arith.mulf %12, %20 : vector<4x8x128xf32>
    %c0_10 = arith.constant 0 : index
    %c0_11 = arith.constant 0 : index
    %c0_12 = arith.constant 0 : index
    %22 = vector.load %arg8[%c0_10, %c0_11, %c0_12] : memref<4x8x128xf32, #tpu.memory_space<vmem>>, vector<4x8x128xf32>
    %23 = arith.mulf %21, %7 : vector<4x8x128xf32>
    %24 = vector.shape_cast %23 : vector<4x8x128xf32> to vector<4x1x8x128xf32>
    %cst_13 = arith.constant dense<0.000000e+00> : vector<4x8x128xf32>
    %25 = vector.multi_reduction <add>, %24, %cst_13 [1] : vector<4x1x8x128xf32> to vector<4x8x128xf32>
    %26 = arith.addf %22, %25 : vector<4x8x128xf32>
    %c0_14 = arith.constant 0 : index
    %c0_15 = arith.constant 0 : index
    %c0_16 = arith.constant 0 : index
    %27 = vector.load %arg8[%c0_14, %c0_15, %c0_16] : memref<4x8x128xf32, #tpu.memory_space<vmem>>, vector<4x8x128xf32>
    tpu.vector_store %arg8[%c0_14, %c0_15, %c0_16], %26 {strides = array<i32>} : memref<4x8x128xf32, #tpu.memory_space<vmem>>, vector<4x8x128xf32>,
    %c0_17 = arith.constant 0 : index
    %c0_18 = arith.constant 0 : index
    %c0_19 = arith.constant 0 : index
    %28 = vector.load %arg9[%c0_17, %c0_18, %c0_19] : memref<4x8x128xf32, #tpu.memory_space<vmem>>, vector<4x8x128xf32>
    %29 = arith.mulf %21, %21 : vector<4x8x128xf32>
    %30 = vector.shape_cast %29 : vector<4x8x128xf32> to vector<4x1x8x128xf32>
    %cst_20 = arith.constant dense<0.000000e+00> : vector<4x8x128xf32>
    %31 = vector.multi_reduction <add>, %30, %cst_20 [1] : vector<4x1x8x128xf32> to vector<4x8x128xf32>
    %32 = arith.addf %28, %31 : vector<4x8x128xf32>
    %c0_21 = arith.constant 0 : index
    %c0_22 = arith.constant 0 : index
    %c0_23 = arith.constant 0 : index
    %33 = vector.load %arg9[%c0_21, %c0_22, %c0_23] : memref<4x8x128xf32, #tpu.memory_space<vmem>>, vector<4x8x128xf32>
    tpu.vector_store %arg9[%c0_21, %c0_22, %c0_23], %32 {strides = array<i32>} : memref<4x8x128xf32, #tpu.memory_space<vmem>>, vector<4x8x128xf32>,
    %c0_24 = arith.constant 0 : index
    %c0_25 = arith.constant 0 : index
    %c0_26 = arith.constant 0 : index
    %34 = vector.load %arg10[%c0_24, %c0_25, %c0_26] : memref<4x8x128xf32, #tpu.memory_space<vmem>>, vector<4x8x128xf32>
    %35 = vector.shape_cast %7 : vector<4x8x128xf32> to vector<4x1x8x128xf32>
    %cst_27 = arith.constant dense<0.000000e+00> : vector<4x8x128xf32>
    %36 = vector.multi_reduction <add>, %35, %cst_27 [1] : vector<4x1x8x128xf32> to vector<4x8x128xf32>
    %37 = arith.addf %34, %36 : vector<4x8x128xf32>
    %c0_28 = arith.constant 0 : index
    %c0_29 = arith.constant 0 : index
    %c0_30 = arith.constant 0 : index
    %38 = vector.load %arg10[%c0_28, %c0_29, %c0_30] : memref<4x8x128xf32, #tpu.memory_space<vmem>>, vector<4x8x128xf32>
    tpu.vector_store %arg10[%c0_28, %c0_29, %c0_30], %37 {strides = array<i32>} : memref<4x8x128xf32, #tpu.memory_space<vmem>>, vector<4x8x128xf32>,
    %c0_i32_31 = arith.constant 0 : i32
    %39 = arith.cmpi eq, %arg2, %c0_i32_31 : i32
    %40 = arith.extui %39 : i1 to i32
    %c0_i32_32 = arith.constant 0 : i32
    %41 = arith.cmpi ne, %40, %c0_i32_32 : i32
    scf.if %41 {
      %c0_33 = arith.constant 0 : index
      %c0_34 = arith.constant 0 : index
      %c0_35 = arith.constant 0 : index
      %42 = vector.load %arg8[%c0_33, %c0_34, %c0_35] : memref<4x8x128xf32, #tpu.memory_space<vmem>>, vector<4x8x128xf32>
      %cst_36 = arith.constant dense<0.000000e+00> : vector<4x128xf32>
      %43 = vector.multi_reduction <add>, %42, %cst_36 [1] : vector<4x8x128xf32> to vector<4x128xf32>
      %cst_37 = arith.constant dense<0.000000e+00> : vector<4xf32>
      %44 = vector.multi_reduction <add>, %43, %cst_37 [1] : vector<4x128xf32> to vector<4xf32>
      %45 = vector.shape_cast %44 : vector<4xf32> to vector<1x1x1x4xf32>
      %c0_38 = arith.constant 0 : index
      %c0_39 = arith.constant 0 : index
      %c0_40 = arith.constant 0 : index
      %c0_41 = arith.constant 0 : index
      %46 = vector.load %arg5[%c0_38, %c0_39, %c0_40, %c0_41] : memref<1x1x1x4xf32, #tpu.memory_space<vmem>>, vector<1x1x1x4xf32>
      tpu.vector_store %arg5[%c0_38, %c0_39, %c0_40, %c0_41], %45 {strides = array<i32>} : memref<1x1x1x4xf32, #tpu.memory_space<vmem>>, vector<1x1x1x4xf32>,
      %c0_42 = arith.constant 0 : index
      %c0_43 = arith.constant 0 : index
      %c0_44 = arith.constant 0 : index
      %47 = vector.load %arg9[%c0_42, %c0_43, %c0_44] : memref<4x8x128xf32, #tpu.memory_space<vmem>>, vector<4x8x128xf32>
      %cst_45 = arith.constant dense<0.000000e+00> : vector<4x128xf32>
      %48 = vector.multi_reduction <add>, %47, %cst_45 [1] : vector<4x8x128xf32> to vector<4x128xf32>
      %cst_46 = arith.constant dense<0.000000e+00> : vector<4xf32>
      %49 = vector.multi_reduction <add>, %48, %cst_46 [1] : vector<4x128xf32> to vector<4xf32>
      %50 = vector.shape_cast %49 : vector<4xf32> to vector<1x1x1x4xf32>
      %c0_47 = arith.constant 0 : index
      %c0_48 = arith.constant 0 : index
      %c0_49 = arith.constant 0 : index
      %c0_50 = arith.constant 0 : index
      %51 = vector.load %arg6[%c0_47, %c0_48, %c0_49, %c0_50] : memref<1x1x1x4xf32, #tpu.memory_space<vmem>>, vector<1x1x1x4xf32>
      tpu.vector_store %arg6[%c0_47, %c0_48, %c0_49, %c0_50], %50 {strides = array<i32>} : memref<1x1x1x4xf32, #tpu.memory_space<vmem>>, vector<1x1x1x4xf32>,
      %c0_51 = arith.constant 0 : index
      %c0_52 = arith.constant 0 : index
      %c0_53 = arith.constant 0 : index
      %52 = vector.load %arg10[%c0_51, %c0_52, %c0_53] : memref<4x8x128xf32, #tpu.memory_space<vmem>>, vector<4x8x128xf32>
      %cst_54 = arith.constant dense<0.000000e+00> : vector<4x128xf32>
      %53 = vector.multi_reduction <add>, %52, %cst_54 [1] : vector<4x8x128xf32> to vector<4x128xf32>
      %cst_55 = arith.constant dense<0.000000e+00> : vector<4xf32>
      %54 = vector.multi_reduction <add>, %53, %cst_55 [1] : vector<4x128xf32> to vector<4xf32>
      %55 = vector.shape_cast %54 : vector<4xf32> to vector<1x1x1x4xf32>
      %c0_56 = arith.constant 0 : index
      %c0_57 = arith.constant 0 : index
      %c0_58 = arith.constant 0 : index
      %c0_59 = arith.constant 0 : index
      %56 = vector.load %arg7[%c0_56, %c0_57, %c0_58, %c0_59] : memref<1x1x1x4xf32, #tpu.memory_space<vmem>>, vector<1x1x1x4xf32>
      tpu.vector_store %arg7[%c0_56, %c0_57, %c0_58, %c0_59], %55 {strides = array<i32>} : memref<1x1x1x4xf32, #tpu.memory_space<vmem>>, vector<1x1x1x4xf32>,
    } else {
    }
    return
  }
  func.func @transform_0(%arg0: i32, %arg1: i32, %arg2: i32) -> (i32, i32, i32, i32) {
    %c1_i32 = arith.constant 1 : i32
    %0 = arith.muli %arg1, %c1_i32 : i32
    %1 = arith.addi %0, %arg2 : i32
    %c0_i32 = arith.constant 0 : i32
    %c0_i32_0 = arith.constant 0 : i32
    %c0_i32_1 = arith.constant 0 : i32
    return %arg0, %c0_i32, %1, %c0_i32_0 : i32, i32, i32, i32
  }
  func.func @transform_1(%arg0: i32, %arg1: i32, %arg2: i32) -> (i32, i32, i32, i32) {
    %c1_i32 = arith.constant 1 : i32
    %0 = arith.muli %arg1, %c1_i32 : i32
    %1 = arith.addi %0, %arg2 : i32
    %c0_i32 = arith.constant 0 : i32
    %c0_i32_0 = arith.constant 0 : i32
    %c0_i32_1 = arith.constant 0 : i32
    return %arg0, %c0_i32, %1, %c0_i32_0 : i32, i32, i32, i32
  }
  func.func @transform_2(%arg0: i32, %arg1: i32, %arg2: i32) -> (i32, i32, i32, i32) {
    %c0_i32 = arith.constant 0 : i32
    %c0_i32_0 = arith.constant 0 : i32
    %c0_i32_1 = arith.constant 0 : i32
    return %arg0, %arg1, %c0_i32, %c0_i32_0 : i32, i32, i32, i32
  }
  func.func @transform_3(%arg0: i32, %arg1: i32, %arg2: i32) -> (i32, i32, i32, i32) {
    %c0_i32 = arith.constant 0 : i32
    %c0_i32_0 = arith.constant 0 : i32
    %c0_i32_1 = arith.constant 0 : i32
    return %arg0, %arg1, %c0_i32, %c0_i32_0 : i32, i32, i32, i32
  }
  func.func @transform_4(%arg0: i32, %arg1: i32, %arg2: i32) -> (i32, i32, i32, i32) {
    %c0_i32 = arith.constant 0 : i32
    %c0_i32_0 = arith.constant 0 : i32
    %c0_i32_1 = arith.constant 0 : i32
    return %arg0, %arg1, %c0_i32, %c0_i32_0 : i32, i32, i32, i32
  }
}

</mosaic_0001>

<bundles_post_ra>
// kernel: tpu_custom_call.1
= control target key start
LH: loop header
LB: loop body
LE: loop exit
PB: predicated region body
PF: predicated region fallthrough
CT: control target
= control target key end

     0   :  { %s1481_s0 = inlined_call_operand.hbm [shape: f32[2,4,8,128], index: 0, kind: input, shape index: {}]   ;;  %s1482_s1 = inlined_call_operand.hbm [shape: bf16[2,4,8,128], index: 1, kind: input, shape index: {}]   ;;  %s1483_s2 = inlined_call_operand.hbm [shape: f32[2,1,1,4], index: 2, kind: output, shape index: {0}]   ;;  %s1484_s3 = inlined_call_operand.hbm [shape: f32[2,1,1,4], index: 3, kind: output, shape index: {1}]   ;;  %s1485_s4 = inlined_call_operand.hbm [shape: f32[2,1,1,4], index: 4, kind: output, shape index: {2}]  }
   0x1   :  { %1489 = sst [smem:[#allocation18_spill]] %s1481_s0 }
   0x2   :  { %10 = vsyncpa [#allocation6], 0 }
   0x3   :  { %12 = vsyncpa [#allocation6 + $0x1], 0 }
   0x4   :  { %13 = vsyncpa [#allocation9], 0 }
   0x5   :  { %15 = vsyncpa [#allocation9 + $0x1], 0 }
   0x6   :  { %16 = vsyncpa [#allocation7], 0 }
   0x7   :  { %18 = vsyncpa [#allocation7 + $0x1], 0 }
   0x8   :  { %19 = vsyncpa [#allocation12], 0 }
   0x9   :  { %21 = vsyncpa [#allocation12 + $0x1], 0  ;;  %s1142_s15 = smov 0   ;;  %s1144_s16 = smov 0  }
   0xa   :  { %s1146_s17 = smov 0   ;;  %s1148_s18 = smov 0  }
   0xb   :  { %s1150_s19 = smov 0   ;;  %s1152_s20 = smov 0  }
   0xc LB: > { %s1173_s21 = sadd.s32 4294967295, %s1106_s20   ;;  %s1487_s22 = sadd.s32 4294967294, %s1106_s20   ;;  %s1106_s20 = sphi %s1152_s20, %s27_s20   ;;  %s1102_s19 = sphi %s1150_s19, %s1507_s19   ;;  %s1098_s18 = sphi %s1148_s18, %s1506_s18   ;;  %s1094_s17 = sphi %s1146_s17, %s1505_s17   ;;  %s1090_s16 = sphi %s1144_s16, %s1504_s16   ;;  %s1086_s15 = sphi %s1142_s15, %s1503_s15  }
   0xd   : > { %s46_s23 = sadd.s32 1, %s1102_s19  ;;  %s57_s24 = sadd.s32 1, %s1094_s17 }
   0xe   : > { %p48_p0 = scmp.ge.s32.totalorder %s46_s23, 2  ;;  %p64_p1 = scmp.ne.s32.totalorder %s1094_s17, %s1090_s16 }
   0xf   : > { %p65_p2 = scmp.eq.s32.totalorder %s1106_s20, 0  ;;  %p70_p3 = scmp.ne.s32.totalorder %s1090_s16, %s1086_s15 }
  0x10   : > { %s1509_s23 = smov (%p48_p0, %s46_s23), 0  ;;  %p71_p5 = scmp.eq.s32.totalorder %s1173_s21, 0 }
  0x11   : > { %p1185_p4 = por %p65_p2, %p64_p1  ;;  %s52_s26 = ssub.s32 %s1102_s19, %s1509_s23 }
  0x12   : > { %p126_p6 = scmp.eq.s32.totalorder %s1173_s21, 1  ;;  %p55_p7 = scmp.eq.s32.totalorder %s52_s26, 0 }
  0x13   : > { %p1193_p8 = por %p71_p5, %p70_p3  ;;  %p132_p10 = scmp.eq.s32.totalorder %s1487_s22, 1 }
  0x14   : > { %p1197_p9 = por %p126_p6, %p64_p1  ;;  %p836_p13 = scmp.lt.s32.totalorder %s1106_s20, 2 }
  0x15   : > { %s1491_s27 = scalar_select %p1193_p8, 1, 0 }
  0x16   : > { %s1492_s28 = scalar_select %p1197_p9, 1, 0 }
  0x17   : > { %s1204_s29 = scalar_select %p55_p7, %s1094_s17, %s57_s24  }
  0x18   : > { %p1206_p11 = por %p132_p10, %p70_p3  ;;  %s1213_s5 = sand.u32 1, %s1094_s17  }
  0x19   : > { %s784_s6 = sshll.u32 %s1213_s5, 5  ;;  %s798_s7 = sshll.u32 %s1102_s19, 9 }
  0x1a   : > { %s1493_s30 = scalar_select %p1206_p11, 1, 0 }
  0x1b   : > { %s1494_s0 = sld [smem:[#allocation18_spill]]  ;;  %s212_s11 = scalar_lea.vmem [#allocation5], %s784_s6 }
  0x1c   : > { %s221_s12 = sshll.u32 %s212_s11, 4  ;;  %p1226_p0 = pnand %p836_p13, %p1185_p4  ;;  %s1222_s12 = int_to_ptr.vmem [resolvable:$true] %s221_s12 }
  0x1d   : > { %s209_s14 = scalar_lea.sflag [#allocation6], %s1213_s5 }
  0x1e   : > { %p902_p3 = pneg %p1226_p0 }
  0x21   : > { %s1220_s10 = scalar_lea.hbm %s1494_s0, %s798_s7  ;;  %s905_s25 = scalar_lea.hbm %s1494_s0, 1024 }
  0x22   : > { %s900_s24 = scalar_lea.hbm %s1220_s10, 512  ;;  %p906_p4 = scmp.lt.u32.totalorder %s1220_s10, %s1494_s0 }
  0x23   : > { %p901_p2 = scmp.ne.s32.totalorder %s1220_s10, %s900_s24  ;;  %p907_p7 = scmp.lt.u32.totalorder %s905_s25, %s900_s24 }
  0x24   : > { %p909_p13 = scmp.lt.u32.totalorder %s900_s24, %s1220_s10 }
  0x25   : > { %p903_p5 = pnand %p902_p3, %p901_p2  ;;  %p908_p10 = por %p907_p7, %p906_p4 }
  0x27   : > { %p904_p6 = pneg %p903_p5  ;;  %p910_p12 = por %p909_p13, %p908_p10 }
  0x29   : > { %p911_p1 = pnand %p910_p12, %p904_p6 }
  0x2b   : > { %914 = shalt.err (!%p911_p1)
}
  0x2c   : > { %s915_s9 = scalar_lea.vmem %s1222_s12, 512  ;;  %s1108_s11 = smov [#allocation5]  }
  0x2d   : > { %p916_p2 = scmp.ne.s32.totalorder %s1222_s12, %s915_s9  ;;  %s920_s26 = sshll.u32 %s1108_s11, 4  ;;  %s921_s26 = int_to_ptr.vmem [resolvable:$false] %s920_s26 }
  0x2e   : > { %s922_s6 = scalar_lea.vmem %s921_s26, 1024  ;;  %p923_p9 = scmp.lt.s32.totalorder %s1222_s12, %s921_s26 }
  0x2f   : > { %p918_p5 = pnand %p916_p2, %p902_p3  ;;  %p924_p4 = scmp.lt.s32.totalorder %s922_s6, %s915_s9 }
  0x31   : > { %p919_p11 = pneg %p918_p5  ;;  %p925_p7 = por %p924_p4, %p923_p9 }
  0x33   : > { %p926_p10 = pnand %p925_p7, %p919_p11 }
  0x35   : > { %929 = shalt.err (!%p926_p10)
}
  0x36   : > { %s1109_s24 = smov 128   ;;  %s1110_s25 = smov 8  }
  0x37   : > { %822 = dma.hbm_to_vmem [thread:$0]  (!%p1226_p0), %s1220_s10, 512, %s1222_s12, %s209_s14, %s1109_s24, %s1109_s24, %s1110_s25  }
  0x38   : > { %p252_p12 = scmp.lt.s32.totalorder %s1106_s20, 3  ;;  %s787_s7 = sshll.u32 %s1213_s5, 4 }
  0x39   : > { %s799_s8 = sshll.u32 %s1102_s19, 8  ;;  %p1496_p9 = scmp.ge.s32.totalorder %s1106_s20, 1 }
  0x3a   : > { %s1271_s6 = scalar_lea.hbm %s1482_s1, %s799_s8  ;;  %s235_s22 = scalar_lea.vmem [#allocation8], %s787_s7 }
  0x3b   : > { %p1264_p11 = pnand %p1496_p9, %p252_p12  ;;  %s244_s0 = sshll.u32 %s235_s22, 4  ;;  %s1273_s0 = int_to_ptr.vmem [resolvable:$true] %s244_s0 }
  0x3c   : > { %s232_s10 = scalar_lea.sflag [#allocation9], %s1213_s5  ;;  %s930_s12 = scalar_lea.hbm %s1271_s6, 256 }
  0x3d   : > { %p931_p1 = scmp.ne.s32.totalorder %s1271_s6, %s930_s12  ;;  %s935_s25 = scalar_lea.hbm %s1482_s1, 512 }
  0x3e   : > { %p936_p2 = scmp.lt.u32.totalorder %s1271_s6, %s1482_s1  ;;  %p937_p5 = scmp.lt.u32.totalorder %s935_s25, %s930_s12 }
  0x3f   : > { %p933_p6 = pnand %p931_p1, %p902_p3  ;;  %p939_p7 = scmp.lt.u32.totalorder %s930_s12, %s1271_s6 }
  0x40   : > { %p938_p4 = por %p937_p5, %p936_p2 }
  0x41   : > { %p934_p13 = pneg %p933_p6 }
  0x42   : > { %p940_p10 = por %p939_p7, %p938_p4 }
  0x44   : > { %p941_p12 = pnand %p940_p10, %p934_p13 }
  0x46   : > { %944 = shalt.err (!%p941_p12)
}
  0x47   : > { %s945_s22 = scalar_lea.vmem %s1273_s0, 256  ;;  %s1111_s7 = smov [#allocation8]  }
  0x48   : > { %p946_p9 = scmp.ne.s32.totalorder %s1273_s0, %s945_s22  ;;  %s950_s26 = sshll.u32 %s1111_s7, 4  ;;  %s951_s26 = int_to_ptr.vmem [resolvable:$false] %s950_s26 }
  0x49   : > { %s952_s14 = scalar_lea.vmem %s951_s26, 512  ;;  %p953_p8 = scmp.lt.s32.totalorder %s1273_s0, %s951_s26 }
  0x4a   : > { %p948_p1 = pnand %p946_p9, %p902_p3  ;;  %p954_p2 = scmp.lt.s32.totalorder %s952_s14, %s945_s22 }
  0x4c   : > { %p949_p6 = pneg %p948_p1  ;;  %p955_p5 = por %p954_p2, %p953_p8 }
  0x4e   : > { %p956_p4 = pnand %p955_p5, %p949_p6 }
  0x50   : > { %959 = shalt.err (!%p956_p4)
}
  0x51   : > { %s1112_s12 = smov 64   ;;  %s1113_s24 = smov 4  }
  0x52   : > { %825 = dma.hbm_to_vmem [thread:$0]  (!%p1226_p0), %s1271_s6, 256, %s1273_s0, %s232_s10, %s1112_s12, %s1112_s12, %s1113_s24  }
  0x53   : > { %256 = sbr.rel (%p1264_p11) target bundleno = 363 (0x16b), region = 28  ;;  %s1304_s25 = sand.u32 (!%p1264_p11), 1, %s1090_s16  }
  0x54   : > { %s791_s8 = sshll.u32 (!%p1264_p11), %s1304_s25, 5  ;;  %s259_s11 = scalar_lea.sflag (!%p1264_p11), [#allocation6], %s1304_s25 }
  0x55   : > { %s262_s22 = scalar_lea.vmem (!%p1264_p11), [#allocation5], %s791_s8  ;;  %p1498_p8 = scmp.ne.s32.totalorder (!%p1264_p11), %s1491_s27, 0 }
  0x5a   : > { %1069 = dma.done.wait (%p1498_p8), %s259_s11, 512  }
  0x5b   : > { %1071 = vsyncadd (%p1498_p8), %s259_s11, 4294966784  ;;  %s792_s0 = sshll.u32 %s1304_s25, 4  ;;  %s268_s5 = scalar_lea.sflag [#allocation9], %s1304_s25 }
  0x5c   : > { %s271_s13 = scalar_lea.vmem [#allocation8], %s792_s0 }
  0x5d   : > { %1073 = dma.done.wait (%p1498_p8), %s268_s5, 256  }
  0x5e   : > { %1075 = vsyncadd (%p1498_p8), %s268_s5, 4294967040  ;;  %v326_v0 = vld [vmem:[%s262_s22] sm:$0xff]  ;;  %v327_v1 = vld [vmem:[%s262_s22 + $0x8] sm:$0xff]  ;;  %vm455_vm0 = vcmask 1041409   ;;  %vm457_vm1 = vcmask 1042434   ;;  %vm459_vm2 = vcmask 1043459  }
  0x5f   : > { %v328_v2 = vld [vmem:[%s262_s22 + $0x10] sm:$0xff]  ;;  %v329_v3 = vld [vmem:[%s262_s22 + $0x18] sm:$0xff]  ;;  %v338_v4 = vmax.f32 %v326_v0, %v327_v1  ;;  %vm462_vm3 = vcmask 1043456   ;;  %vm474_vm4 = vcmask 24576   ;;  %s307_s27 = scalar_lea.vmem [#allocation13], %s1304_s25  ;;  %s572_s9 = sand.u32 1, %s1173_s21  }
  0x60   : > { %v801_v5 = vld [vmem:[%s271_s13] sm:$0xff]   ;;  %v808_v6 = vld [vmem:[%s271_s13 + $0x8] sm:$0xff]   ;;  %v339_v7 = vmax.f32 %v328_v2, %v329_v3  ;;  %s793_s6 = sshll.u32 %s1098_s18, 4  ;;  %s301_s10 = scalar_lea.vmem [#allocation11], %s1304_s25 }
  0x61   : > { %v1318_v8 = vunpack.c.l.bf16 %v801_v5  ;;  %v1320_v9 = vunpack.c.h.bf16 %v801_v5  ;;  %v1322_v10 = vunpack.c.l.bf16 %v808_v6  ;;  %v1324_v11 = vunpack.c.h.bf16 %v808_v6  ;;  %s604_s7 = sshll.u32 %s301_s10, 4  ;;  %s618_s26 = sshll.u32 %s307_s27, 4  ;;  %s1367_s7 = int_to_ptr.vmem [resolvable:$true] %s604_s7  ;;  %s1374_s26 = int_to_ptr.vmem [resolvable:$true] %s618_s26 }
  0x62   : > { %v340_v12 = vmax.f32 %v338_v4, %v339_v7  ;;  %s1361_s24 = scalar_lea.hbm %s1484_s3, %s793_s6  ;;  %s295_s8 = scalar_lea.vmem [#allocation10], %s1304_s25 }
  0x63   : > { %v526_v13 = vrot.slane %v1318_v8, 4  ;;  %v532_v14 = vrot.slane %v1320_v9, 4  ;;  %v538_v15 = vrot.slane %v1322_v10, 4  ;;  %v544_v16 = vrot.slane %v1324_v11, 4  ;;  %s590_s11 = sshll.u32 %s295_s8, 4  ;;  %s1372_s18 = scalar_lea.hbm %s1485_s4, %s793_s6  ;;  %s1382_s11 = int_to_ptr.vmem [resolvable:$true] %s590_s11 }
  0x64   : > { %v341_v17 = vsub.f32 %v326_v0, %v340_v12  ;;  %v342_v18 = vsub.f32 %v327_v1, %v340_v12  ;;  %v343_v19 = vsub.f32 %v328_v2, %v340_v12  ;;  %v344_v20 = vsub.f32 %v329_v3, %v340_v12  ;;  %s1380_s13 = scalar_lea.hbm %s1483_s2, %s793_s6  ;;  %s960_s14 = scalar_lea.vmem %s1367_s7, 16 }
  0x65   : > { %v527_v21 = vadd.f32 %v1318_v8, %v526_v13  ;;  %v533_v22 = vadd.f32 %v1320_v9, %v532_v14  ;;  %v539_v23 = vadd.f32 %v1322_v10, %v538_v15  ;;  %v545_v24 = vadd.f32 %v1324_v11, %v544_v16  ;;  %p961_p0 = scmp.ne.s32.totalorder %s1367_s7, %s960_s14  ;;  %p1499_p3 = scmp.ne.s32.totalorder %s1492_s28, 0 }
  0x66   : > { %v345_v25 = vmul.f32 1.442695, %v341_v17  ;;  %v347_v26 = vmul.f32 1.442695, %v342_v18  ;;  %v349_v27 = vmul.f32 1.442695, %v343_v19 }
  0x67   : > { %v351_v28 = vmul.f32 1.442695, %v344_v20  ;;  %v528_v29 = vrot.slane %v527_v21, 2  ;;  %v534_v30 = vrot.slane %v533_v22, 2  ;;  %v540_v31 = vrot.slane %v539_v23, 2  ;;  %p962_p11 = pnand %p961_p0, %p1499_p3  ;;  %s1114_s12 = smov [#allocation11]  }
  0x68   : > { %890 = vpow2.f32 %v345_v25  ;;  %v546_v32 = vrot.slane %v545_v24, 2  ;;  %s964_s22 = sshll.u32 %s1114_s12, 4  ;;  %s965_s22 = int_to_ptr.vmem [resolvable:$false] %s964_s22 }
  0x69   : > { %892 = vpow2.f32 %v347_v26  ;;  %v529_v33 = vadd.f32 %v528_v29, %v527_v21  ;;  %v535_v34 = vadd.f32 %v534_v30, %v533_v22  ;;  %v541_v35 = vadd.f32 %v540_v31, %v539_v23  ;;  %p963_p13 = pneg %p962_p11  ;;  %s966_s21 = scalar_lea.vmem %s965_s22, 32 }
  0x6a   : > { %894 = vpow2.f32 %v349_v27  ;;  %v547_v36 = vadd.f32 %v546_v32, %v545_v24  ;;  %p967_p7 = scmp.lt.s32.totalorder %s1367_s7, %s965_s22  ;;  %p968_p10 = scmp.lt.s32.totalorder %s966_s21, %s960_s14 }
  0x6b   : > { %896 = vpow2.f32 %v351_v28  ;;  %v530_v37 = vrot.slane %v529_v33, 1  ;;  %v536_v38 = vrot.slane %v535_v34, 1  ;;  %v542_v39 = vrot.slane %v541_v35, 1 }
  0x6c   : > { %v548_v40 = vrot.slane %v547_v36, 1  ;;  %p969_p12 = por %p968_p10, %p967_p7 }
  0x6d   : > { %v531_v41 = vadd.f32 %v530_v37, %v529_v33  ;;  %v537_v42 = vadd.f32 %v536_v38, %v535_v34  ;;  %v543_v43 = vadd.f32 %v542_v39, %v541_v35 }
  0x6e   : > { %v549_v44 = vadd.f32 %v548_v40, %v547_v36  ;;  %p970_p9 = pnand %p969_p12, %p963_p13 }
  0x6f   : > { %v554_v45 = vsel %vm455_vm0, %v537_v42, %v531_v41 }
  0x70   : > { %v555_v46 = vsel %vm457_vm1, %v543_v43, %v554_v45 }
  0x71   : > { %v556_v47 = vsel %vm459_vm2, %v549_v44, %v555_v46 }
  0x72   : > { %v891_v48 = vpop.eup %890  ;;  %v558_v49 = vsel %vm462_vm3, %v556_v47, 0.0 }
  0x73   : > { %v893_v50 = vpop.eup %892  ;;  %559 = vadd.xlane.f32.xlu1 %v558_v49 }
  0x74   : > { %v895_v51 = vpop.eup %894  ;;  %v353_v52 = vadd.f32 %v893_v50, %v891_v48 }
  0x75   : > { %v897_v53 = vpop.eup %896 }
  0x76   : > { %v354_v54 = vadd.f32 %v895_v51, %v353_v52 }
  0x78   : > { %v355_v55 = vadd.f32 %v897_v53, %v354_v54 }
  0x7a   : > { %898 = vrcp.f32 %v355_v55 }
  0x84   : > { %v899_v56 = vpop.eup %898 }
  0x85   : > { %v357_v57 = vmul.f32 %v899_v56, %v355_v55 }
  0x87   : > { %v358_v58 = vsub.f32 2.0, %v357_v57 }
  0x89   : > { %v359_v59 = vmul.f32 %v899_v56, %v358_v58 }
  0x8b   : > { %v360_v60 = vmul.f32 %v891_v48, %v359_v59  ;;  %v361_v61 = vmul.f32 %v893_v50, %v359_v59  ;;  %v362_v62 = vmul.f32 %v895_v51, %v359_v59  ;;  %v363_v63 = vmul.f32 %v897_v53, %v359_v59 }
  0x8d   : > { %v388_v0 = vmul.f32 %v360_v60, %v360_v60  ;;  %v389_v1 = vmul.f32 %v361_v61, %v361_v61  ;;  %v390_v2 = vmul.f32 %v362_v62, %v362_v62  ;;  %v391_v3 = vmul.f32 %v363_v63, %v363_v63 }
  0x8e   : > { %v368_v4 = vmul.f32 %v1318_v8, %v360_v60  ;;  %v369_v5 = vmul.f32 %v1320_v9, %v361_v61  ;;  %v370_v6 = vmul.f32 %v1322_v10, %v362_v62  ;;  %v371_v7 = vmul.f32 %v1324_v11, %v363_v63 }
  0x8f   : > { %v480_v12 = vrot.slane %v388_v0, 4  ;;  %v486_v13 = vrot.slane %v389_v1, 4  ;;  %v492_v14 = vrot.slane %v390_v2, 4  ;;  %v498_v15 = vrot.slane %v391_v3, 4 }
  0x90   : > { %v427_v16 = vrot.slane %v368_v4, 4  ;;  %v433_v17 = vrot.slane %v369_v5, 4  ;;  %v439_v18 = vrot.slane %v370_v6, 4  ;;  %v445_v19 = vrot.slane %v371_v7, 4 }
  0x91   : > { %v481_v20 = vadd.f32 %v480_v12, %v388_v0  ;;  %v487_v21 = vadd.f32 %v486_v13, %v389_v1  ;;  %v493_v22 = vadd.f32 %v492_v14, %v390_v2  ;;  %v499_v23 = vadd.f32 %v498_v15, %v391_v3 }
  0x92   : > { %v428_v24 = vadd.f32 %v427_v16, %v368_v4  ;;  %v434_v8 = vadd.f32 %v433_v17, %v369_v5  ;;  %v440_v25 = vadd.f32 %v439_v18, %v370_v6  ;;  %v446_v9 = vadd.f32 %v445_v19, %v371_v7 }
  0x93   : > { %v482_v26 = vrot.slane %v481_v20, 2  ;;  %v488_v10 = vrot.slane %v487_v21, 2  ;;  %v494_v27 = vrot.slane %v493_v22, 2  ;;  %v500_v11 = vrot.slane %v499_v23, 2 }
  0x94   : > { %v429_v28 = vrot.slane %v428_v24, 2  ;;  %v435_v29 = vrot.slane %v434_v8, 2  ;;  %v441_v30 = vrot.slane %v440_v25, 2  ;;  %v447_v31 = vrot.slane %v446_v9, 2 }
  0x95   : > { %v483_v32 = vadd.f32 %v482_v26, %v481_v20  ;;  %v489_v33 = vadd.f32 %v488_v10, %v487_v21  ;;  %v495_v34 = vadd.f32 %v494_v27, %v493_v22  ;;  %v501_v35 = vadd.f32 %v500_v11, %v499_v23 }
  0x96   : > { %v430_v36 = vadd.f32 %v429_v28, %v428_v24  ;;  %v436_v37 = vadd.f32 %v435_v29, %v434_v8  ;;  %v442_v38 = vadd.f32 %v441_v30, %v440_v25  ;;  %v448_v39 = vadd.f32 %v447_v31, %v446_v9 }
  0x97   : > { %v484_v40 = vrot.slane %v483_v32, 1  ;;  %v490_v41 = vrot.slane %v489_v33, 1  ;;  %v496_v42 = vrot.slane %v495_v34, 1  ;;  %v502_v43 = vrot.slane %v501_v35, 1 }
  0x98   : > { %v431_v44 = vrot.slane %v430_v36, 1  ;;  %v437_v45 = vrot.slane %v436_v37, 1  ;;  %v443_v46 = vrot.slane %v442_v38, 1  ;;  %v449_v47 = vrot.slane %v448_v39, 1 }
  0x99   : > { %v485_v48 = vadd.f32 %v484_v40, %v483_v32  ;;  %v491_v49 = vadd.f32 %v490_v41, %v489_v33  ;;  %v497_v50 = vadd.f32 %v496_v42, %v495_v34  ;;  %v503_v51 = vadd.f32 %v502_v43, %v501_v35 }
  0x9a   : > { %v432_v52 = vadd.f32 %v431_v44, %v430_v36  ;;  %v438_v53 = vadd.f32 %v437_v45, %v436_v37  ;;  %v444_v54 = vadd.f32 %v443_v46, %v442_v38  ;;  %v450_v55 = vadd.f32 %v449_v47, %v448_v39 }
  0x9b   : > { %v508_v56 = vsel %vm455_vm0, %v491_v49, %v485_v48  ;;  %v467_v0 = vlaneseq }
  0x9c   : > { %v509_v57 = vsel %vm457_vm1, %v497_v50, %v508_v56  ;;  %v456_v58 = vsel %vm455_vm0, %v438_v53, %v432_v52 }
  0x9d   : > { %v510_v59 = vsel %vm459_vm2, %v503_v51, %v509_v57  ;;  %v458_v60 = vsel %vm457_vm1, %v444_v54, %v456_v58  ;;  %v468_v1 = vand.u32 127, %v467_v0  ;;  %v470_v2 = vshrl.u32 %v467_v0, 7 }
  0x9e   : > { %v512_v61 = vsel %vm462_vm3, %v510_v59, 0.0  ;;  %v460_v62 = vsel %vm459_vm2, %v450_v55, %v458_v60 }
  0x9f   : > { %513 = vadd.xlane.f32.xlu0 %v512_v61  ;;  %v463_v63 = vsel %vm462_vm3, %v460_v62, 0.0  ;;  %v1350_v3 = vsub.s32 %v468_v1, %v470_v2 }
  0xa3   : > { %464 = vadd.xlane.f32.xlu0 %v463_v63 }
 0x100   : > { %v560_v4 = vpop.xlane.xlu1 %559 }
 0x101   : > { %v565_v5 = vrot.slane %v560_v4, %v1350_v3 }
 0x103   : > { %567 = vst.msk [vmem:[%s307_s27] sm:$0x1] %vm474_vm4, %v565_v5  ;;  %s1384_s27 = scalar_lea.sflag [#allocation12], %s572_s9 }
 0x12c   : > { %v514_v6 = vpop.xlane.xlu0 %513 }
 0x12d   : > { %v519_v7 = vrot.slane %v514_v6, %v1350_v3 }
 0x12f   : > { %521 = vst.msk [vmem:[%s301_s10] sm:$0x1] %vm474_vm4, %v519_v7 }
 0x130   : > { %v465_v12 = vpop.xlane.xlu0 %464 }
 0x131   : > { %973 = shalt.err (!%p970_p9)
}
 0x132   : > { %s974_s9 = scalar_lea.hbm %s1361_s24, 16  ;;  %s978_s0 = scalar_lea.hbm %s1484_s3, 32 }
 0x133   : > { %p975_p1 = scmp.ne.s32.totalorder %s1361_s24, %s974_s9  ;;  %p979_p5 = scmp.lt.u32.totalorder %s1361_s24, %s1484_s3 }
 0x134   : > { %p980_p4 = scmp.lt.u32.totalorder %s978_s0, %s974_s9  ;;  %p982_p0 = scmp.lt.u32.totalorder %s974_s9, %s1361_s24 }
 0x135   : > { %p976_p6 = pnand %p975_p1, %p1499_p3 }
 0x136   : > { %p981_p8 = por %p980_p4, %p979_p5 }
 0x137   : > { %p977_p2 = pneg %p976_p6 }
 0x138   : > { %p983_p11 = por %p982_p0, %p981_p8 }
 0x13a   : > { %p984_p13 = pnand %p983_p11, %p977_p2 }
 0x13c   : > { %987 = shalt.err (!%p984_p13)
}
 0x13d   : > { %814 = dma.vmem_to_hbm [thread:$0]  (%p1499_p3), %s1367_s7, 16, %s1361_s24, %s1384_s27   ;;  %v472_v13 = vrot.slane %v465_v12, %v1350_v3 }
 0x13e   : > { %s988_s14 = scalar_lea.vmem %s1374_s26, 16  ;;  %s1115_s22 = smov [#allocation13]  }
 0x13f   : > { %p989_p7 = scmp.ne.s32.totalorder %s1374_s26, %s988_s14  ;;  %s992_s21 = sshll.u32 %s1115_s22, 4  ;;  %s993_s21 = int_to_ptr.vmem [resolvable:$false] %s992_s21 }
 0x140   : > { %s994_s9 = scalar_lea.vmem %s993_s21, 32  ;;  %p995_p9 = scmp.lt.s32.totalorder %s1374_s26, %s993_s21 }
 0x141   : > { %p990_p10 = pnand %p989_p7, %p1499_p3  ;;  %p996_p1 = scmp.lt.s32.totalorder %s994_s9, %s988_s14 }
 0x143   : > { %p991_p12 = pneg %p990_p10  ;;  %p997_p6 = por %p996_p1, %p995_p9 }
 0x145   : > { %p998_p2 = pnand %p997_p6, %p991_p12 }
 0x147   : > { %1001 = shalt.err (!%p998_p2)
}
 0x148   : > { %s1002_s7 = scalar_lea.hbm %s1372_s18, 16  ;;  %s1006_s10 = scalar_lea.hbm %s1485_s4, 32 }
 0x149   : > { %p1003_p5 = scmp.ne.s32.totalorder %s1372_s18, %s1002_s7  ;;  %p1007_p0 = scmp.lt.u32.totalorder %s1372_s18, %s1485_s4 }
 0x14a   : > { %p1008_p11 = scmp.lt.u32.totalorder %s1006_s10, %s1002_s7  ;;  %p1010_p7 = scmp.lt.u32.totalorder %s1002_s7, %s1372_s18 }
 0x14b   : > { %p1004_p4 = pnand %p1003_p5, %p1499_p3 }
 0x14c   : > { %p1009_p13 = por %p1008_p11, %p1007_p0 }
 0x14d   : > { %p1005_p8 = pneg %p1004_p4 }
 0x14e   : > { %p1011_p10 = por %p1010_p7, %p1009_p13 }
 0x150   : > { %p1012_p12 = pnand %p1011_p10, %p1005_p8 }
 0x152   : > { %1015 = shalt.err (!%p1012_p12)
}
 0x153   : > { %815 = dma.vmem_to_hbm [thread:$0]  (%p1499_p3), %s1374_s26, 16, %s1372_s18, %s1384_s27   ;;  %475 = vst.msk [vmem:[%s295_s8] sm:$0x1] %vm474_vm4, %v472_v13 }
 0x154   : > { %s569_s12 = scalar_lea.sflag [#allocation7], %s1304_s25  ;;  %s1016_s14 = scalar_lea.vmem %s1382_s11, 16 }
 0x155   : > { %p1017_p9 = scmp.ne.s32.totalorder %s1382_s11, %s1016_s14  ;;  %s1116_s22 = smov [#allocation10]  }
 0x156   : > { %s1020_s21 = sshll.u32 %s1116_s22, 4  ;;  %s1021_s21 = int_to_ptr.vmem [resolvable:$false] %s1020_s21 }
 0x157   : > { %p1018_p1 = pnand %p1017_p9, %p1499_p3  ;;  %s1022_s9 = scalar_lea.vmem %s1021_s21, 32 }
 0x158   : > { %p1023_p2 = scmp.lt.s32.totalorder %s1382_s11, %s1021_s21  ;;  %p1024_p5 = scmp.lt.s32.totalorder %s1022_s9, %s1016_s14 }
 0x159   : > { %p1019_p6 = pneg %p1018_p1 }
 0x15a   : > { %p1025_p4 = por %p1024_p5, %p1023_p2 }
 0x15c   : > { %p1026_p8 = pnand %p1025_p4, %p1019_p6 }
 0x15e   : > { %1029 = shalt.err (!%p1026_p8)
}
 0x15f   : > { %s1030_s25 = scalar_lea.hbm %s1380_s13, 16  ;;  %s1034_s18 = scalar_lea.hbm %s1483_s2, 32 }
 0x160   : > { %p1031_p0 = scmp.ne.s32.totalorder %s1380_s13, %s1030_s25  ;;  %p1035_p7 = scmp.lt.u32.totalorder %s1380_s13, %s1483_s2 }
 0x161   : > { %p1036_p10 = scmp.lt.u32.totalorder %s1034_s18, %s1030_s25  ;;  %p1038_p9 = scmp.lt.u32.totalorder %s1030_s25, %s1380_s13 }
 0x162   : > { %p1032_p11 = pnand %p1031_p0, %p1499_p3 }
 0x163   : > { %p1037_p12 = por %p1036_p10, %p1035_p7 }
 0x164   : > { %p1033_p13 = pneg %p1032_p11 }
 0x165   : > { %p1039_p1 = por %p1038_p9, %p1037_p12 }
 0x167   : > { %p1040_p6 = pnand %p1039_p1, %p1033_p13 }
 0x169   : > { %1043 = shalt.err (!%p1040_p6)
}
 0x16a   : > { %813 = dma.vmem_to_hbm [thread:$0]  (%p1499_p3), %s1382_s11, 16, %s1380_s13, %s569_s12  }
 0x16b PF: > { %s630_s24 = sand.u32 1, %s1086_s15   ;;  %p1500_p2 = scmp.ne.s32.totalorder %s1493_s30, 0 }
 0x16c   : > { %p1501_p5 = scmp.ge.s32.totalorder %s1106_s20, 2  ;;  %s631_s6 = scalar_lea.sflag [#allocation7], %s630_s24 }
 0x16e   : > { %p827_p4 = pnand %p1501_p5, %p1500_p2 }
 0x170   : > { %1077 = dma.done.wait (!%p827_p4), %s631_s6, 16  }
 0x171   : > { %1079 = vsyncadd (!%p827_p4), %s631_s6, 4294967280  ;;  %s1502_s10 = sadd.s32 4294967294, %s1106_s20  }
 0x172   : > { %s638_s0 = sand.u32 1, %s1502_s10  }
 0x173   : > { %s639_s5 = scalar_lea.sflag [#allocation12], %s638_s0 }
 0x174   : > { %1081 = dma.done.wait (!%p827_p4), %s639_s5, 32  }
 0x175   : > { %1083 = vsyncadd (!%p827_p4), %s639_s5, 4294967264  ;;  %s27_s20 = sadd.s32 1, %s1106_s20   ;;  %s1503_s15 = smov %s1090_s16 }
 0x176   : > { %p24_p3 = scmp.ge.s32.totalorder %s27_s20, 4   ;;  %s1504_s16 = smov %s1094_s17 }
 0x177   : > { %s1505_s17 = smov %s1204_s29  ;;  %s1506_s18 = smov %s1102_s19 }
 0x178   : > { %s1507_s19 = smov %s1509_s23  ;;  %26 = sbr.rel (!%p24_p3) target bundleno = 12 (0xc), region = 126 }
 0x17f   :  { %651 = vsyncpa [#allocation6], 1 }
 0x180   :  { %653 = vsyncpa [#allocation6 + $0x1], 1 }
 0x181   :  { %654 = vsyncpa [#allocation9], 1 }
 0x182   :  { %656 = vsyncpa [#allocation9 + $0x1], 1 }
 0x183   :  { %657 = vsyncpa [#allocation7], 1 }
 0x184   :  { %659 = vsyncpa [#allocation7 + $0x1], 1 }
 0x185   :  { %660 = vsyncpa [#allocation12], 1 }
 0x186   :  { %662 = vsyncpa [#allocation12 + $0x1], 1 }

</bundles_post_ra>
